<compile_context>
chip_gen: v7x
topology: tpu7x:2x2x1
jax: 0.10.0
libtpu: 0.0.40
codegen_flags: <defaults>
</compile_context>

<pallas_src>
import jax
import jax.numpy as jnp
from jax.experimental import pallas as pl
from jax.experimental.pallas import tpu as pltpu

_LANE = 128

_GEN_PARAMS = {
    # generation: (feature-block byte budget, vmem_limit_bytes, bf16 multiply OK)
    "v5e":   (8 << 20, 64 << 20, False),   # 128 MiB VMEM, VPU has no bf16
    "v6e":   (8 << 20, 64 << 20, True),    # 128 MiB VMEM, bf16 VPU
    "v7x":   (6 << 20, 44 << 20, True),    # 64 MiB VMEM per TensorCore
    "other": (4 << 20, 32 << 20, False),   # conservative fallback
}


def _tpu_generation():
    try:
        kind = jax.devices()[0].device_kind.lower()
    except Exception:
        return "other"
    if "v5 lite" in kind or "v5e" in kind or "v5litepod" in kind:
        return "v5e"
    if "v6" in kind or "trillium" in kind:
        return "v6e"
    if "v7" in kind:
        return "v7x"
    return "other"


def _round_up(x, m):
    return ((x + m - 1) // m) * m


def _auto_tiles(n_rows, d, x_itemsize, block_budget):
    """Pick (tm, tk): ~block_budget-byte feature blocks, rows a multiple of 128."""
    row_bytes = max(d * x_itemsize, 1)
    tm = (block_budget // row_bytes) // _LANE * _LANE
    if tm >= _LANE:
        tk = d                                   # whole feature dim per block
    else:
        # d too wide even for a 128-row block: tile the feature dim instead.
        tm = 2 * _LANE
        tk = max(512, (block_budget // (tm * x_itemsize)) // _LANE * _LANE)
    tm = min(tm, 8192)                           # per-step overhead already amortized

    if n_rows < _LANE:
        return _LANE, tk                         # rows get padded to one 128-row block
    cap = (n_rows // _LANE) * _LANE              # block never exceeds the array
    nm_min = 2 if n_rows >= 1024 else 1          # keep both v7x TensorCores busy
    balanced = max(_LANE, _round_up(-(-n_rows // nm_min), _LANE))
    return max(_LANE, min(tm, cap, balanced)), tk


def _make_direct_kernel(d, r_blocks, mul_dtype):
    """d <= 128: single lane-chunk, no cross-step accumulation, no scratch."""
    def kernel(x_ref, w_ref, o_ref):
        w = w_ref[...]                                            # (1, d), resident
        for r in range(r_blocks):
            xg = x_ref[r * _LANE:(r + 1) * _LANE, :].astype(mul_dtype)   # (128, d)
            pg = (xg * w).astype(jnp.float32)                            # (128, d)
            # Row sums, lane-dense: (128,d) -XLU transpose-> (d,128) -sublane reduce->
            o_ref[0, r:r + 1, :] = jnp.sum(pg.T, axis=0, keepdims=True
                                           ).astype(o_ref.dtype)
    return kernel


def _make_acc_kernel(d, tk, r_blocks, mul_dtype):
    """d > 128: strip-mine lanes into a (tm, 128) f32 accumulator; optional k grid."""
    n_full = tk // _LANE
    rem = tk - n_full * _LANE            # only non-zero when tk == d (single k block)
    need_mask = (d % tk) != 0            # ragged last k block -> zero invalid lanes

    def kernel(x_ref, w_ref, o_ref, acc_ref):
        k = pl.program_id(1)

        @pl.when(k == 0)
        def _init():
            acc_ref[...] = jnp.zeros_like(acc_ref)

        valid = (d - k * tk) if need_mask else None

        def accumulate(start, width, acc_view):
            xc = x_ref[:, pl.ds(start, width)].astype(mul_dtype)
            wc = w_ref[:, pl.ds(start, width)]                    # already mul_dtype
            prod = xc * wc                                        # (tm, width), VPU
            if need_mask:
                lane = jax.lax.broadcasted_iota(jnp.int32, (1, width), 1) + start
                prod = jnp.where(lane < valid, prod, jnp.zeros_like(prod))
            acc_view[...] = acc_view[...] + prod                  # f32 accumulation

        @pl.loop(0, n_full, unroll=(n_full <= 4))
        def _chunks(c):
            accumulate(pl.multiple_of(c * _LANE, _LANE), _LANE, acc_ref)

        if rem > 0:
            accumulate(n_full * _LANE, rem, acc_ref.at[:, :rem])

        @pl.when(k == pl.num_programs(1) - 1)
        def _finalize():
            for r in range(r_blocks):
                blk = acc_ref[r * _LANE:(r + 1) * _LANE, :]       # (128, 128) f32
                o_ref[0, r:r + 1, :] = jnp.sum(blk.T, axis=0, keepdims=True
                                               ).astype(o_ref.dtype)
    return kernel


def mle_forward(features, weight, *, out_dtype=jnp.float32, tm=None, tk=None):
    """features: (N, d), weight: (1, d)  ->  (N,) row-wise dot products (f32)."""
    n_rows, d = features.shape
    assert weight.shape == (1, d), (weight.shape, d)

    gen = _tpu_generation()
    block_budget, vmem_limit, bf16_ok = _GEN_PARAMS[gen]
    mul_dtype = (jnp.bfloat16
                 if (features.dtype == jnp.bfloat16 and bf16_ok) else jnp.float32)

    x_item = features.dtype.itemsize
    auto_tm, auto_tk = _auto_tiles(n_rows, d, x_item, block_budget)
    tm = auto_tm if tm is None else tm
    tk = auto_tk if tk is None else tk
    assert tm % _LANE == 0, tm
    assert tk == d or tk % _LANE == 0, tk
    tk = min(tk, d)

    # Tiny batches: pad rows up to one block (cheap copy; extra rows sliced off).
    x = features
    if n_rows < tm:
        x = jnp.pad(x, ((0, tm - n_rows), (0, 0)))
    n_eff = x.shape[0]

    nm = pl.cdiv(n_eff, tm)
    nk = pl.cdiv(d, tk)
    r_blocks = tm // _LANE

    # Pre-cast the weight to the multiply dtype once; it stays VMEM resident.
    w = weight.astype(mul_dtype)

    direct = d <= _LANE                      # single lane chunk -> no accumulator
    kernel = (_make_direct_kernel(d, r_blocks, mul_dtype) if direct
              else _make_acc_kernel(d, tk, r_blocks, mul_dtype))
    scratch = [] if direct else [pltpu.VMEM((tm, _LANE), jnp.float32)]

    block_bytes = tm * tk * x_item
    acc_bytes = 0 if direct else tm * _LANE * 4
    use_triple = (nm * nk >= 4
                  and 3 * block_bytes + acc_bytes + (8 << 20) <= vmem_limit)

    feat_map = lambda i, k: (i, k)
    feat_spec = pl.BlockSpec((tm, tk), feat_map)
    if use_triple and hasattr(pl, "Buffered"):
        try:  # third input buffer to hide DMA jitter on the pure feature stream
            feat_spec = pl.BlockSpec((tm, tk), feat_map, pipeline_mode=pl.Buffered(3))
        except TypeError:
            feat_spec = pl.BlockSpec((tm, tk), feat_map)

    out3 = pl.pallas_call(
        kernel,
        out_shape=jax.ShapeDtypeStruct((nm, r_blocks, _LANE), out_dtype),
        grid_spec=pltpu.PrefetchScalarGridSpec(
            num_scalar_prefetch=0,
            grid=(nm, nk),
            in_specs=[
                feat_spec,                                    # streamed feature blocks
                pl.BlockSpec((1, tk), lambda i, k: (0, k)),   # resident weight (slice)
            ],
            out_specs=pl.BlockSpec((1, r_blocks, _LANE), lambda i, k: (i, 0, 0)),
            scratch_shapes=scratch,
        ),
        compiler_params=pltpu.CompilerParams(
            dimension_semantics=("parallel", "arbitrary"),
            vmem_limit_bytes=vmem_limit,
        ),
        cost_estimate=pl.CostEstimate(
            flops=2 * n_rows * d,
            transcendentals=0,
            bytes_accessed=n_rows * d * x_item + d * 4
            + n_rows * jnp.dtype(out_dtype).itemsize,
        ),
    )(x, w)

    # (nm, R, 128) -> (nm*tm,) -> first N rows; reshape/slice are layout-free in HBM.
    return out3.reshape(-1)[:n_rows]


def init_mle_params(key, d):
    """Match nn.init.normal_(reward_head.weight, 0, 0.1); shape (1, d)."""
    return jax.random.normal(key, (1, d), dtype=jnp.float32) * 0.1


def project_parameters(weight, B=2.0):
    """Training-time no-grad projection (tiny O(d) op; plain JAX, no kernel)."""
    w = weight.reshape(-1)
    w = w - jnp.mean(w)
    norm = jnp.linalg.norm(w)
    w = jnp.where(norm > B, w * (B / norm), w)
    return w.reshape(1, -1)


if __name__ == "__main__":
    key = jax.random.PRNGKey(0)
    k_w, k_x, k_x2, k_x3 = jax.random.split(key, 4)

    # Case 1: module-scale shapes (small batch of feature vectors), f32, direct path.
    d, N = 32, 8
    weight = init_mle_params(k_w, d)                               # (1, d)
    features = jax.random.normal(k_x, (N, d), dtype=jnp.float32)   # (N, d)
    out = jax.block_until_ready(mle_forward(features, weight))
    ref = (features @ weight.T)[:, 0]
    assert out.shape == (N,)
    assert jnp.allclose(out, ref, atol=1e-5, rtol=1e-5), "f32 mismatch"

    # Case 2: ragged rows + remainder lane chunk (accumulator path), bf16 features.
    N2, d2 = 600, 192
    w2 = init_mle_params(jax.random.PRNGKey(1), d2)
    x2 = jax.random.normal(k_x2, (N2, d2), dtype=jnp.bfloat16)
    out2 = jax.block_until_ready(mle_forward(x2, w2))
    ref2 = jnp.sum(x2.astype(jnp.float32) * w2, axis=-1)
    assert out2.shape == (N2,)
    assert jnp.allclose(out2, ref2, atol=2e-2, rtol=2e-2), "bf16 mismatch"

    # Case 3: force the k-tiled grid reduction + ragged-lane masking path (small shape).
    N3, d3 = 300, 200
    w3 = init_mle_params(jax.random.PRNGKey(2), d3)
    x3 = jax.random.normal(k_x3, (N3, d3), dtype=jnp.float32)
    out3 = jax.block_until_ready(mle_forward(x3, w3, tm=128, tk=128))
    ref3 = (x3 @ w3.T)[:, 0]
    assert out3.shape == (N3,)
    assert jnp.allclose(out3, ref3, atol=1e-4, rtol=1e-4), "k-tiled mismatch"

    # project_parameters sanity (training-time utility, not part of forward()).
    w_proj = project_parameters(weight, B=2.0)
    assert w_proj.shape == weight.shape

    print("KERNEL_OK")
</pallas_src>

<mosaic_0001>
module attributes {stable_mosaic.version = 11 : i64} {
  func.func @kernel(%arg0: i32, %arg1: i32, %arg2: memref<128x32xf32, #tpu.memory_space<vmem>>, %arg3: memref<1x32xf32, #tpu.memory_space<vmem>>, %arg4: memref<1x1x128xf32, #tpu.memory_space<vmem>>) attributes {dimension_semantics = [#tpu.dimension_semantics<parallel>, #tpu.dimension_semantics<arbitrary>], iteration_bounds = array<i64: 1, 1>, scalar_prefetch = 0 : i64, scratch_operands = 0 : i64, tpu.core_type = #tpu.core_type<tc>, window_params = [{transform_indices = @transform_0, window_bounds = array<i64: 128, 32>}, {transform_indices = @transform_1, window_bounds = array<i64: 1, 32>}, {transform_indices = @transform_2, window_bounds = array<i64: 1, 1, 128>}]} {
    %c0 = arith.constant 0 : index
    %c0_0 = arith.constant 0 : index
    %0 = vector.load %arg3[%c0, %c0_0] : memref<1x32xf32, #tpu.memory_space<vmem>>, vector<1x32xf32>
    %c0_1 = arith.constant 0 : index
    %c0_2 = arith.constant 0 : index
    %1 = vector.load %arg2[%c0_1, %c0_2] : memref<128x32xf32, #tpu.memory_space<vmem>>, vector<128x32xf32>
    %2 = vector.broadcast %0 : vector<1x32xf32> to vector<128x32xf32>
    %3 = arith.mulf %1, %2 : vector<128x32xf32>
    %4 = tpu.transpose %3, [1, 0] : vector<128x32xf32> -> vector<32x128xf32>
    %cst = arith.constant dense<0.000000e+00> : vector<128xf32>
    %5 = vector.multi_reduction <add>, %4, %cst [0] : vector<32x128xf32> to vector<128xf32>
    %6 = vector.shape_cast %5 : vector<128xf32> to vector<1x128xf32>
    %c0_3 = arith.constant 0 : index
    %c0_4 = arith.constant 0 : index
    %c0_5 = arith.constant 0 : index
    %7 = vector.load %arg4[%c0_3, %c0_4, %c0_5] : memref<1x1x128xf32, #tpu.memory_space<vmem>>, vector<1x1x128xf32>
    %8 = vector.shape_cast %7 : vector<1x1x128xf32> to vector<1x128xf32>
    %9 = vector.shape_cast %6 : vector<1x128xf32> to vector<1x1x128xf32>
    tpu.vector_store %arg4[%c0_3, %c0_4, %c0_5], %9 {strides = array<i32>} : memref<1x1x128xf32, #tpu.memory_space<vmem>>, vector<1x1x128xf32>,
    return
  }
  func.func @transform_0(%arg0: i32, %arg1: i32) -> (i32, i32) {
    %c0_i32 = arith.constant 0 : i32
    return %arg0, %arg1 : i32, i32
  }
  func.func @transform_1(%arg0: i32, %arg1: i32) -> (i32, i32) {
    %c0_i32 = arith.constant 0 : i32
    %c0_i32_0 = arith.constant 0 : i32
    return %c0_i32, %arg1 : i32, i32
  }
  func.func @transform_2(%arg0: i32, %arg1: i32) -> (i32, i32, i32) {
    %c0_i32 = arith.constant 0 : i32
    %c0_i32_0 = arith.constant 0 : i32
    %c0_i32_1 = arith.constant 0 : i32
    return %arg0, %c0_i32, %c0_i32_0 : i32, i32, i32
  }
}

</mosaic_0001>

<bundles_post_ra>
// kernel: tpu_custom_call.1
= control target key start
LH: loop header
LB: loop body
LE: loop exit
PB: predicated region body
PF: predicated region fallthrough
CT: control target
= control target key end

     0   :  { %s212_s0 = inlined_call_operand.vmem [shape: f32[128,32], index: 0, kind: input, shape index: {}]   ;;  %s213_s1 = inlined_call_operand.vmem [shape: f32[1,32], index: 1, kind: input, shape index: {}]   ;;  %s214_s2 = inlined_call_operand.hbm [shape: f32[1,1,128], index: 2, kind: output, shape index: {}]  }
   0x1   :  { %v107_v0 = vld [vmem:[%s213_s1] ss:$0 sm:$0xff]  ;;  %v14_v2 = vld [vmem:[%s212_s0 + $0x8] sm:$0xff]  ;;  %v15_v5 = vld [vmem:[%s212_s0 + $0x10] sm:$0xff] }
   0x2   :  { %v13_v1 = vld [vmem:[%s212_s0] sm:$0xff]  ;;  %v36_v4 = vmul.f32 %v107_v0, %v14_v2 }
   0x3   :  { %v35_v3 = vmul.f32 %v107_v0, %v13_v1 }
   0x5   :  { %51 = vxpose.xlu0.b32.start [1/16] (narrow) %v35_v3, 32 }
   0x6   :  { %7 = vsyncpa [#allocation3], 0  ;;  %v37_v6 = vmul.f32 %v107_v0, %v15_v5  ;;  %v16_v7 = vld [vmem:[%s212_s0 + $0x18] sm:$0xff]  ;;  %v17_v9 = vld [vmem:[%s212_s0 + $0x20] sm:$0xff]  ;;  %s133_s14 = smov [#allocation2]  }
   0x7   :  { %v38_v8 = vmul.f32 %v107_v0, %v16_v7  ;;  %v39_v10 = vmul.f32 %v107_v0, %v17_v9  ;;  %v18_v11 = vld [vmem:[%s212_s0 + $0x28] sm:$0xff]  ;;  %v19_v13 = vld [vmem:[%s212_s0 + $0x30] sm:$0xff]  ;;  %v20_v15 = vld [vmem:[%s212_s0 + $0x38] sm:$0xff]  ;;  %s99_s15 = sshll.u32 %s133_s14, 4  ;;  %s100_s15 = int_to_ptr.vmem [resolvable:$true] %s99_s15 }
   0x8   :  { %v40_v12 = vmul.f32 %v107_v0, %v18_v11  ;;  %v41_v14 = vmul.f32 %v107_v0, %v19_v13  ;;  %v42_v16 = vmul.f32 %v107_v0, %v20_v15  ;;  %v21_v17 = vld [vmem:[%s212_s0 + $0x40] sm:$0xff]  ;;  %v22_v19 = vld [vmem:[%s212_s0 + $0x48] sm:$0xff]  ;;  %v23_v21 = vld [vmem:[%s212_s0 + $0x50] sm:$0xff]  ;;  %s113_s16 = scalar_lea.vmem %s100_s15, 32  ;;  %p114_p1 = scmp.lt.s32.totalorder %s100_s15, %s100_s15 }
   0x9   :  { %52 = vxpose.xlu0.b32.cont [2/16] (narrow) %v36_v4, 32  ;;  %v43_v18 = vmul.f32 %v107_v0, %v21_v17  ;;  %v44_v20 = vmul.f32 %v107_v0, %v22_v19  ;;  %v45_v22 = vmul.f32 %v107_v0, %v23_v21  ;;  %v24_v23 = vld [vmem:[%s212_s0 + $0x58] sm:$0xff]  ;;  %v25_v25 = vld [vmem:[%s212_s0 + $0x60] sm:$0xff]  ;;  %v26_v27 = vld [vmem:[%s212_s0 + $0x68] sm:$0xff] }
   0xa   :  { %v46_v24 = vmul.f32 %v107_v0, %v24_v23  ;;  %v47_v26 = vmul.f32 %v107_v0, %v25_v25  ;;  %v48_v28 = vmul.f32 %v107_v0, %v26_v27  ;;  %v27_v29 = vld [vmem:[%s212_s0 + $0x70] sm:$0xff]  ;;  %v28_v31 = vld [vmem:[%s212_s0 + $0x78] sm:$0xff]  ;;  %s109_s0 = scalar_lea.vmem %s100_s15, 16 }
   0xb   :  { %v49_v30 = vmul.f32 %v107_v0, %v27_v29  ;;  %v50_v32 = vmul.f32 %v107_v0, %v28_v31  ;;  %p110_p0 = scmp.ne.s32.totalorder %s100_s15, %s109_s0  ;;  %p115_p2 = scmp.lt.s32.totalorder %s113_s16, %s109_s0 }
   0xd   :  { %53 = vxpose.xlu0.b32.cont [3/16] (narrow) %v37_v6, 32  ;;  %p116_p3 = por %p115_p2, %p114_p1 }
   0xf   :  { %p117_p4 = pnand %p116_p3, %p110_p0 }
  0x11   :  { %54 = vxpose.xlu0.b32.cont [4/16] (narrow) %v38_v8, 32 }
  0x15   :  { %55 = vxpose.xlu0.b32.cont [5/16] (narrow) %v39_v10, 32 }
  0x19   :  { %56 = vxpose.xlu0.b32.cont [6/16] (narrow) %v40_v12, 32 }
  0x1d   :  { %57 = vxpose.xlu0.b32.cont [7/16] (narrow) %v41_v14, 32 }
  0x21   :  { %58 = vxpose.xlu0.b32.cont [8/16] (narrow) %v42_v16, 32 }
  0x25   :  { %59 = vxpose.xlu0.b32.cont [9/16] (narrow) %v43_v18, 32 }
  0x29   :  { %60 = vxpose.xlu0.b32.cont [10/16] (narrow) %v44_v20, 32 }
  0x2d   :  { %61 = vxpose.xlu0.b32.cont [11/16] (narrow) %v45_v22, 32 }
  0x31   :  { %62 = vxpose.xlu0.b32.cont [12/16] (narrow) %v46_v24, 32 }
  0x35   :  { %63 = vxpose.xlu0.b32.cont [13/16] (narrow) %v47_v26, 32 }
  0x39   :  { %64 = vxpose.xlu0.b32.cont [14/16] (narrow) %v48_v28, 32 }
  0x3d   :  { %65 = vxpose.xlu0.b32.cont [15/16] (narrow) %v49_v30, 32 }
  0x41   :  { %66 = vxpose.xlu0.b32.end [16/16] (narrow) %v50_v32, 32 }
  0x85   :  { %v67_v33 = vpop.trf.xlu0 }
  0x89   :  { %v68_v34 = vpop.trf.xlu0 }
  0x8a   :  { %v83_v36 = vadd.f32 %v68_v34, %v67_v33 }
  0x8d   :  { %v69_v35 = vpop.trf.xlu0 }
  0x8e   :  { %v84_v37 = vadd.f32 %v83_v36, %v69_v35 }
  0x91   :  { %v70_v38 = vpop.trf.xlu0 }
  0x92   :  { %v85_v39 = vadd.f32 %v84_v37, %v70_v38 }
  0x94   :  { %v86_v40 = vrot.slane %v85_v39, 4 }
  0x96   :  { %v87_v41 = vadd.f32 %v86_v40, %v85_v39 }
  0x98   :  { %v88_v42 = vrot.slane %v87_v41, 2 }
  0x9a   :  { %v89_v43 = vadd.f32 %v88_v42, %v87_v41 }
  0x9c   :  { %v90_v44 = vrot.slane %v89_v43, 1 }
  0x9e   :  { %v91_v45 = vadd.f32 %v90_v44, %v89_v43 }
  0xa0   :  { %92 = vst [vmem:[#allocation2] sm:$0x1] %v91_v45 }
  0xa1   :  { %120 = shalt.err (!%p117_p4)
}
  0xa2   :  { %s121_s18 = scalar_lea.hbm %s214_s2, 16 }
  0xa3   :  { %p122_p5 = scmp.ne.s32.totalorder %s214_s2, %s121_s18  ;;  %p125_p6 = scmp.lt.u32.totalorder %s121_s18, %s214_s2 }
  0xa5   :  { %p127_p7 = pnand %p125_p6, %p122_p5 }
  0xa7   :  { %130 = shalt.err (!%p127_p7)
}
  0xa8   :  { %102 = dma.vmem_to_hbm [thread:$0]  %s100_s15, 16, %s214_s2, [#allocation3]  }
  0xa9   :  { %131 = dma.done.wait [#allocation3], 16  }
  0xaa   :  { %132 = vsyncadd [#allocation3], 4294967280 }
  0xab   :  { %106 = vsyncpa [#allocation3], 1 }

</bundles_post_ra>
